<compile_context>
chip_gen: v6e
topology: v6e:2x2x1
jax: 0.10.0
libtpu: 0.0.40
codegen_flags: <defaults>
</compile_context>

<pallas_src>
import numpy as np
import jax
import jax.numpy as jnp
from jax.experimental import pallas as pl
from jax.experimental.pallas import tpu as pltpu

_LANE = 128
_SUBLANE = 8
_PER_STREAM_BLOCK_CAP = 2 << 20      # cap for one (tile_n, C) streaming block
_TOTAL_BLOCK_BUDGET = 20 << 20       # budget for all streams x double buffers
_VMEM_LIMIT_BYTES = 48 * 1024 * 1024


def _round_up(x, m):
    return ((x + m - 1) // m) * m


# --------------------------------------------------------------------------------------
# Fused Pallas kernel
# --------------------------------------------------------------------------------------
def _make_ride_kernel(num_experts, inv_distill_t, n_rows,
                      has_student, has_div, has_distill, needs_row_mask):
    """Per batch tile, compute and store 4 partial sums into a lane-dense (8,128) block:
       [0]: sum_e sum_i w[t_i]*(lse(final_e_i) - final_e_i[t_i])   (weighted-CE numerator)
       [1]: sum_e sum_i KL(softmax(S_i/dT) || softmax(L_e_i/dT))   (diversity KL)
       [2]: sum_i w[t_i]                                           (CE denominator)
       [3]: sum_i KL(softmax(T_i/Td) || softmax(S_i/Td))           (distill KL)
    """
    inv_td = float(inv_distill_t)

    def _lse_parts(x):
        # one EUP exp pass; returns (lse, exp(x-max), sum_exp)
        m = jnp.max(x, axis=-1, keepdims=True)
        e = jnp.exp(x - m)
        s = jnp.sum(e, axis=-1, keepdims=True)
        return m + jnp.log(s), e, s

    def kernel(*refs):
        out_ref = refs[-1]
        idx = 0
        tgt_ref = refs[idx]; idx += 1
        stu_ref = None
        tea_ref = None
        if has_student:
            stu_ref = refs[idx]; idx += 1
        if has_distill:
            tea_ref = refs[idx]; idx += 1
        ms_ref = refs[idx]; idx += 1
        wb_ref = refs[idx]; idx += 1
        idt_ref = refs[idx]; idx += 1
        exp_refs = refs[idx: idx + num_experts]

        tn, c = exp_refs[0].shape
        bt = pl.program_id(0)

        tgt = tgt_ref[...]                               # (tn, 1) int32
        row_valid = None
        if needs_row_mask:
            row = jax.lax.broadcasted_iota(jnp.int32, (tn, 1), 0)
            row_valid = (bt * tn + row) < n_rows
            tgt = jnp.where(row_valid, tgt, -1)          # -1 => zero one-hot row

        ms = ms_ref[...]                                 # (1, c) m_list * s
        wb = wb_ref[...]                                 # (1, c) per-class CE weight
        idt = idt_ref[...]                               # (1, c) 1 / diversity_temperature

        # ---- expert-invariant one-hot products (computed once per tile) ----
        lane = jax.lax.broadcasted_iota(jnp.int32, (tn, c), 1)
        onehot = (lane == tgt).astype(jnp.float32)
        ohm = onehot * ms                                # margin*s at the target column
        ohw = onehot * wb                                # CE weight at the target column
        ce_den = jnp.sum(ohw)

        ent_s = jnp.float32(0.0)
        dist_sum = jnp.float32(0.0)
        p_s = None
        rowsum_ps = None

        if has_student:
            S = stu_ref[...].astype(jnp.float32)
            if needs_row_mask:
                S = jnp.where(row_valid, S, 0.0)

        # ---- student softmax at the diversity temperature (once per tile) ----
        if has_div:
            sd = S * idt
            lse_sd, e_sd, sum_sd = _lse_parts(sd)
            p_s = e_sd * (1.0 / sum_sd)                  # reuse exp pass from the LSE
            logp_s = sd - lse_sd
            ent_s = jnp.sum(p_s * logp_s)
            rowsum_ps = jnp.sum(p_s, axis=-1, keepdims=True)

        # ---- distillation KL (once per tile) ----
        if has_distill:
            T = tea_ref[...].astype(jnp.float32)
            if needs_row_mask:
                T = jnp.where(row_valid, T, 0.0)
            st = S * inv_td
            tt = T * inv_td
            lse_st, _, _ = _lse_parts(st)
            lse_tt, e_tt, sum_tt = _lse_parts(tt)
            logq_s = st - lse_st
            logp_t = tt - lse_tt
            p_t = e_tt * (1.0 / sum_tt)
            dist_sum = jnp.sum(p_t * (logp_t - logq_s))

        # ---- per-expert work: only 2 full-tile exp passes each ----
        ce_num = jnp.float32(0.0)
        div_sum = jnp.float32(0.0)
        for er in exp_refs:
            L = er[...].astype(jnp.float32)
            if needs_row_mask:
                L = jnp.where(row_valid, L, 0.0)
            # LDAM-margin weighted CE numerator
            final = L - ohm
            lse_f, _, _ = _lse_parts(final)
            ce_num = ce_num + jnp.sum(ohw * (lse_f - final))
            # diversity KL(p_s || softmax(L/dT)):
            #   sum(p_s*logq_l) = sum(p_s*ld) - sum_rows(lse_ld * rowsum(p_s))
            if has_div:
                ld = L * idt
                lse_ld, _, _ = _lse_parts(ld)
                div_sum = div_sum + (ent_s - jnp.sum(p_s * ld)
                                     + jnp.sum(lse_ld * rowsum_ps))

        # ---- emit this tile's partial sums as one lane-dense (8,128) store ----
        row8 = jax.lax.broadcasted_iota(jnp.int32, (_SUBLANE, _LANE), 0)
        col = jax.lax.broadcasted_iota(jnp.int32, (_SUBLANE, _LANE), 1)
        out = jnp.zeros((_SUBLANE, _LANE), jnp.float32)
        for k, v in enumerate((ce_num, div_sum, ce_den, dist_sum)):
            out = jnp.where((row8 == 0) & (col == k), v, out)
        out_ref[...] = out

    return kernel


def _ride_partial_sums(expert_list, student, teacher, target,
                       m_s_vec, w_base_vec, inv_div_temp_vec, distill_temperature,
                       *, has_div, has_distill):
    """Run the fused kernel; return [ce_num, div_kl_sum, ce_den, distill_kl_sum] (4,) f32."""
    E = len(expert_list)
    N, C = expert_list[0].shape
    has_student = has_div or has_distill

    # ---- VMEM-budgeted batch tiling; keep >=2 tiles when possible (v7x dual TC) ----
    itemsizes = [jnp.dtype(x.dtype).itemsize for x in expert_list]
    if has_student:
        itemsizes.append(jnp.dtype(student.dtype).itemsize)
    if has_distill:
        itemsizes.append(jnp.dtype(teacher.dtype).itemsize)
    itemsize = max(itemsizes)
    sub = 16 if (itemsize == 2 and N >= 16) else _SUBLANE   # bf16 native (16,128) sublane tile
    bytes_per_row = _round_up(C, _LANE) * itemsize
    n_streams = E + (1 if has_student else 0) + (1 if has_distill else 0)
    per_stream = min(_PER_STREAM_BLOCK_CAP,
                     max(sub * bytes_per_row, _TOTAL_BLOCK_BUDGET // (2 * n_streams)))
    tile_n = max(sub, (per_stream // bytes_per_row) // sub * sub)
    tile_n = min(tile_n, 512)
    if N > sub:                                            # feed both v7x TensorCores
        tile_n = min(tile_n, _round_up((N + 1) // 2, sub))
    if tile_n >= N:                                        # full-dim block, no row masking
        tile_n = N
    num_bt = (N + tile_n - 1) // tile_n
    needs_row_mask = (N % tile_n) != 0

    # ---- tiny per-class vectors (only small data is reshaped/copied in the wrapper) ----
    tgt2 = jnp.asarray(target, jnp.int32).reshape(N, 1)
    ms_p = jnp.asarray(np.asarray(m_s_vec, np.float32).reshape(1, C))
    wb_p = jnp.asarray(np.asarray(w_base_vec, np.float32).reshape(1, C))
    idt_p = jnp.asarray(np.asarray(inv_div_temp_vec, np.float32).reshape(1, C))

    row_spec = lambda bt: (bt, 0)
    vec_spec = lambda bt: (0, 0)

    in_specs = [pl.BlockSpec((tile_n, 1), row_spec)]
    args = [tgt2]
    if has_student:
        in_specs.append(pl.BlockSpec((tile_n, C), row_spec))
        args.append(student)
    if has_distill:
        in_specs.append(pl.BlockSpec((tile_n, C), row_spec))
        args.append(teacher)
    in_specs += [pl.BlockSpec((1, C), vec_spec)] * 3
    args += [ms_p, wb_p, idt_p]
    in_specs += [pl.BlockSpec((tile_n, C), row_spec)] * E
    args += list(expert_list)

    kernel = _make_ride_kernel(E, 1.0 / float(distill_temperature), N,
                               has_student, has_div, has_distill, needs_row_mask)

    grid_spec = pltpu.PrefetchScalarGridSpec(
        num_scalar_prefetch=0,
        grid=(num_bt,),
        in_specs=in_specs,
        out_specs=pl.BlockSpec((None, _SUBLANE, _LANE), lambda bt: (bt, 0, 0)),
    )

    partials = pl.pallas_call(
        kernel,
        grid_spec=grid_spec,
        out_shape=jax.ShapeDtypeStruct((num_bt, _SUBLANE, _LANE), jnp.float32),
        compiler_params=pltpu.CompilerParams(
            dimension_semantics=("parallel",),
            vmem_limit_bytes=_VMEM_LIMIT_BYTES,
        ),
    )(*args)

    # Tiny cross-tile reduction in the wrapper (keeps the batch axis TC-parallel).
    return jnp.sum(partials[:, 0, :4], axis=0)


def _plain_cross_entropy(logits, target):
    """F.cross_entropy(logits, target) with reduction='mean' (no weight, no margin)."""
    logits = jnp.asarray(logits)
    N, C = logits.shape
    zeros = np.zeros((C,), np.float32)
    ones = np.ones((C,), np.float32)
    sums = _ride_partial_sums([logits], None, None, target, zeros, ones, ones, 1.0,
                              has_div=False, has_distill=False)
    return sums[0] / sums[2]


# --------------------------------------------------------------------------------------
# Module ports
# --------------------------------------------------------------------------------------
class RIDELoss:
    def __init__(self, cls_num_list=None, base_diversity_temperature=1.0, max_m=0.5, s=30,
                 reweight=True, reweight_epoch=-1, base_loss_factor=1.0,
                 additional_diversity_factor=-0.2, reweight_factor=0.05):
        self.base_loss_factor = base_loss_factor
        self.reweight_epoch = reweight_epoch if reweight else -1
        self.s = s
        if cls_num_list is None:
            self.m_list = None
            self.per_cls_weights_enabled = None
            self.per_cls_weights_enabled_diversity = None
        else:
            cls_arr = np.asarray(cls_num_list, dtype=np.float64)
            m_list = 1.0 / np.sqrt(np.sqrt(cls_arr))
            m_list = m_list * (max_m / np.max(m_list))
            self.m_list = np.asarray(m_list, np.float32)
            assert s > 0
            if self.reweight_epoch != -1:
                beta = 0.9999
                effective_num = 1.0 - np.power(beta, cls_arr)
                per_cls_weights = (1.0 - beta) / effective_num
                per_cls_weights = per_cls_weights / np.sum(per_cls_weights) * len(cls_arr)
                self.per_cls_weights_enabled = np.asarray(per_cls_weights, np.float32)
            else:
                self.per_cls_weights_enabled = None
            cls_norm = cls_arr / np.sum(cls_arr)
            C = len(cls_norm)
            pcw = C * cls_norm * reweight_factor + 1 - reweight_factor
            pcw = pcw / np.max(pcw)
            assert np.all(pcw > 0), 'reweight factor is too large: out of bounds'
            self.per_cls_weights_enabled_diversity = np.asarray(pcw, np.float32)
        self.base_diversity_temperature = base_diversity_temperature
        self.additional_diversity_factor = additional_diversity_factor
        # In torch these only exist after _hook_before_epoch; default to "no reweighting".
        self.per_cls_weights_base = None
        self.per_cls_weights_diversity = None

    def to(self, device=None):
        return self

    def _hook_before_epoch(self, epoch):
        if self.reweight_epoch != -1:
            self.epoch = epoch
            if epoch > self.reweight_epoch:
                self.per_cls_weights_base = self.per_cls_weights_enabled
                self.per_cls_weights_diversity = self.per_cls_weights_enabled_diversity
            else:
                self.per_cls_weights_base = None
                self.per_cls_weights_diversity = None

    def _ride_vectors(self, C):
        """Per-class vectors (m_list*s, CE weight, 1/diversity_temperature) + temperature mean."""
        if self.m_list is not None:
            assert len(self.m_list) == C
            m_s = np.asarray(self.m_list, np.float32) * float(self.s)
        else:
            m_s = np.zeros((C,), np.float32)
        if self.per_cls_weights_base is not None:
            w_base = np.asarray(self.per_cls_weights_base, np.float32)
        else:
            w_base = np.ones((C,), np.float32)
        if self.per_cls_weights_diversity is not None:
            div_t = float(self.base_diversity_temperature) * np.asarray(
                self.per_cls_weights_diversity, np.float64)
        else:
            div_t = float(self.base_diversity_temperature) * np.ones((C,), np.float64)
        t_mean = float(np.mean(div_t))
        inv_div_t = np.asarray(1.0 / div_t, np.float32)
        return m_s, w_base, inv_div_t, t_mean

    def _expert_list(self, output_logits, expert_logits):
        if self.additional_diversity_factor == 0:
            return [output_logits] * len(expert_logits)
        return expert_logits

    def forward(self, output_logits, target, extra_info=None):
        output_logits = jnp.asarray(output_logits)
        target = jnp.asarray(target)
        if extra_info is None:
            return _plain_cross_entropy(output_logits, target)
        N, C = output_logits.shape
        expert_logits = [jnp.asarray(l) for l in extra_info['logits']]
        has_div = self.additional_diversity_factor != 0
        experts = self._expert_list(output_logits, expert_logits)
        m_s, w_base, inv_div_t, t_mean = self._ride_vectors(C)
        sums = _ride_partial_sums(experts, output_logits, None, target,
                                  m_s, w_base, inv_div_t, 1.0,
                                  has_div=has_div, has_distill=False)
        ce = sums[0] / sums[2]
        kl = sums[1] / N
        return self.base_loss_factor * ce + self.additional_diversity_factor * (t_mean ** 2) * kl

    __call__ = forward


class RIDELossWithDistill:
    def __init__(self, cls_num_list=None, additional_distill_loss_factor=1.0,
                 distill_temperature=1.0, ride_loss_factor=1.0, **kwargs):
        self.ride_loss = RIDELoss(cls_num_list=cls_num_list, **kwargs)
        self.distill_temperature = distill_temperature
        self.ride_loss_factor = ride_loss_factor
        self.additional_distill_loss_factor = additional_distill_loss_factor

    def to(self, device=None):
        self.ride_loss = self.ride_loss.to(device)
        return self

    def _hook_before_epoch(self, epoch):
        self.ride_loss._hook_before_epoch(epoch)

    def forward(self, student, target=None, teacher=None, extra_info=None):
        student = jnp.asarray(student)
        target = jnp.asarray(target)
        if extra_info is None:
            return self.ride_loss(student, target)
        teacher = jnp.asarray(teacher)
        N, C = student.shape
        expert_logits = [jnp.asarray(l) for l in extra_info['logits']]
        E = len(expert_logits)
        rl = self.ride_loss
        has_div = rl.additional_diversity_factor != 0
        experts = rl._expert_list(student, expert_logits)
        m_s, w_base, inv_div_t, t_mean = rl._ride_vectors(C)
        sums = _ride_partial_sums(experts, student, teacher, target,
                                  m_s, w_base, inv_div_t, self.distill_temperature,
                                  has_div=has_div, has_distill=True)
        ride = (rl.base_loss_factor * sums[0] / sums[2]
                + rl.additional_diversity_factor * (t_mean ** 2) * sums[1] / N)
        distill = (self.distill_temperature ** 2) * sums[3] / N
        return E * (self.ride_loss_factor * ride
                    + self.additional_distill_loss_factor * distill)

    __call__ = forward


# --------------------------------------------------------------------------------------
# Pure-JAX reference (mirrors the torch math) + self-test
# --------------------------------------------------------------------------------------
def _ref_cross_entropy(logits, target, weight=None):
    logp = jax.nn.log_softmax(jnp.asarray(logits, jnp.float32), axis=-1)
    nll = -jnp.take_along_axis(logp, jnp.asarray(target, jnp.int32)[:, None], axis=-1)[:, 0]
    if weight is None:
        return jnp.mean(nll)
    w = jnp.asarray(weight, jnp.float32)[target]
    return jnp.sum(w * nll) / jnp.sum(w)


def _ref_ride_loss(module, output_logits, target, extra_info=None):
    if extra_info is None:
        return _ref_cross_entropy(output_logits, target)
    loss = 0.0
    N, C = output_logits.shape
    for L in extra_info['logits']:
        ride_logits = output_logits if module.additional_diversity_factor == 0 else L
        if module.m_list is None:
            loss = loss + module.base_loss_factor * _ref_cross_entropy(ride_logits, target)
        else:
            onehot = jax.nn.one_hot(target, C, dtype=jnp.float32)
            m_list = jnp.asarray(module.m_list, jnp.float32)
            batch_m = jnp.sum(m_list[None, :] * onehot, axis=1, keepdims=True)
            x_m = ride_logits - batch_m * module.s
            final = jnp.where(onehot > 0, x_m, ride_logits)
            loss = loss + module.base_loss_factor * _ref_cross_entropy(
                final, target, module.per_cls_weights_base)
        if module.per_cls_weights_diversity is not None:
            dT = module.base_diversity_temperature * jnp.asarray(
                module.per_cls_weights_diversity, jnp.float32)[None, :]
            t_mean = float(jnp.mean(dT))
        else:
            dT = module.base_diversity_temperature
            t_mean = module.base_diversity_temperature
        log_q = jax.nn.log_softmax(L / dT, axis=1)
        p = jax.nn.softmax(output_logits / dT, axis=1)
        kl = jnp.sum(p * (jnp.log(p) - log_q)) / N
        loss = loss + module.additional_diversity_factor * t_mean * t_mean * kl
    return loss


def _ref_ride_with_distill(module, student, target, teacher, extra_info=None):
    if extra_info is None:
        return _ref_ride_loss(module.ride_loss, student, target, None)
    loss = 0.0
    N = student.shape[0]
    for _ in extra_info['logits']:
        loss = loss + module.ride_loss_factor * _ref_ride_loss(
            module.ride_loss, student, target, extra_info)
        Td = module.distill_temperature
        log_q = jax.nn.log_softmax(student / Td, axis=1)
        p = jax.nn.softmax(teacher / Td, axis=1)
        kl = jnp.sum(p * (jnp.log(p) - log_q)) / N
        loss = loss + module.additional_distill_loss_factor * Td * Td * kl
    return loss


if __name__ == "__main__":
    key = jax.random.PRNGKey(0)
    ks = jax.random.split(key, 10)
    N, C, E = 8, 32, 3

    student = jax.random.normal(ks[0], (N, C), jnp.float32)
    teacher = jax.random.normal(ks[1], (N, C), jnp.float32)
    experts = [jax.random.normal(ks[2 + i], (N, C), jnp.float32) for i in range(E)]
    target = jax.random.randint(ks[5], (N,), 0, C, dtype=jnp.int32)
    extra_info = {'logits': experts}

    # Long-tailed class counts.
    cls_num_list = [max(1, int(1000 * (0.85 ** i))) for i in range(C)]

    # Case 1: full path (LDAM margin + class reweighting + diversity + distill).
    crit = RIDELossWithDistill(cls_num_list=cls_num_list, reweight_epoch=0)
    crit._hook_before_epoch(5)  # enables per-class reweighting
    loss = crit(student, target, teacher=teacher, extra_info=extra_info)
    jax.block_until_ready(loss)
    ref = _ref_ride_with_distill(crit, student, target, teacher, extra_info)
    np.testing.assert_allclose(np.asarray(loss), np.asarray(ref), rtol=5e-4, atol=1e-5)

    # Case 2: no cls_num_list (plain CE base loss + diversity + distill).
    crit2 = RIDELossWithDistill()
    loss2 = crit2(student, target, teacher=teacher, extra_info=extra_info)
    jax.block_until_ready(loss2)
    ref2 = _ref_ride_with_distill(crit2, student, target, teacher, extra_info)
    np.testing.assert_allclose(np.asarray(loss2), np.asarray(ref2), rtol=5e-4, atol=1e-5)

    # Case 3: extra_info=None path -> plain cross-entropy on the student logits.
    loss3 = crit(student, target)
    jax.block_until_ready(loss3)
    ref3 = _ref_cross_entropy(student, target)
    np.testing.assert_allclose(np.asarray(loss3), np.asarray(ref3), rtol=5e-4, atol=1e-5)

    # Case 4: irregular shapes (N=13, C=37) exercising the in-kernel row-mask path,
    #         non-unit distill temperature, 2 experts.
    N4, C4, E4 = 13, 37, 2
    stu4 = jax.random.normal(ks[6], (N4, C4), jnp.float32)
    tea4 = jax.random.normal(ks[7], (N4, C4), jnp.float32)
    experts4 = [jax.random.normal(jax.random.fold_in(ks[8], i), (N4, C4), jnp.float32)
                for i in range(E4)]
    target4 = jax.random.randint(ks[9], (N4,), 0, C4, dtype=jnp.int32)
    extra4 = {'logits': experts4}
    cls_num_list4 = [max(1, int(500 * (0.9 ** i))) for i in range(C4)]
    crit4 = RIDELossWithDistill(cls_num_list=cls_num_list4, reweight_epoch=0,
                                distill_temperature=2.0)
    crit4._hook_before_epoch(3)
    loss4 = crit4(stu4, target4, teacher=tea4, extra_info=extra4)
    jax.block_until_ready(loss4)
    ref4 = _ref_ride_with_distill(crit4, stu4, target4, tea4, extra4)
    np.testing.assert_allclose(np.asarray(loss4), np.asarray(ref4), rtol=5e-4, atol=1e-5)

    print("KERNEL_OK")
</pallas_src>

<mosaic_0001>
module attributes {stable_mosaic.version = 11 : i64} {
  func.func @kernel(%arg0: i32, %arg1: memref<8x1xi32, #tpu.memory_space<vmem>>, %arg2: memref<8x32xf32, #tpu.memory_space<vmem>>, %arg3: memref<8x32xf32, #tpu.memory_space<vmem>>, %arg4: memref<1x32xf32, #tpu.memory_space<vmem>>, %arg5: memref<1x32xf32, #tpu.memory_space<vmem>>, %arg6: memref<1x32xf32, #tpu.memory_space<vmem>>, %arg7: memref<8x32xf32, #tpu.memory_space<vmem>>, %arg8: memref<8x32xf32, #tpu.memory_space<vmem>>, %arg9: memref<8x32xf32, #tpu.memory_space<vmem>>, %arg10: memref<1x8x128xf32, #tpu.memory_space<vmem>>) attributes {dimension_semantics = [#tpu.dimension_semantics<parallel>], iteration_bounds = array<i64: 1>, scalar_prefetch = 0 : i64, scratch_operands = 0 : i64, tpu.core_type = #tpu.core_type<tc>, window_params = [{transform_indices = @transform_0, window_bounds = array<i64: 8, 1>}, {transform_indices = @transform_1, window_bounds = array<i64: 8, 32>}, {transform_indices = @transform_2, window_bounds = array<i64: 8, 32>}, {pipeline_mode = #tpu.pipeline_mode<synchronous>, transform_indices = @transform_3, window_bounds = array<i64: 1, 32>}, {pipeline_mode = #tpu.pipeline_mode<synchronous>, transform_indices = @transform_4, window_bounds = array<i64: 1, 32>}, {pipeline_mode = #tpu.pipeline_mode<synchronous>, transform_indices = @transform_5, window_bounds = array<i64: 1, 32>}, {transform_indices = @transform_6, window_bounds = array<i64: 8, 32>}, {transform_indices = @transform_7, window_bounds = array<i64: 8, 32>}, {transform_indices = @transform_8, window_bounds = array<i64: 8, 32>}, {transform_indices = @transform_9, window_bounds = array<i64: 1, 8, 128>}]} {
    %c0 = arith.constant 0 : index
    %c0_0 = arith.constant 0 : index
    %0 = vector.load %arg1[%c0, %c0_0] : memref<8x1xi32, #tpu.memory_space<vmem>>, vector<8x1xi32>
    %c0_1 = arith.constant 0 : index
    %c0_2 = arith.constant 0 : index
    %1 = vector.load %arg4[%c0_1, %c0_2] : memref<1x32xf32, #tpu.memory_space<vmem>>, vector<1x32xf32>
    %c0_3 = arith.constant 0 : index
    %c0_4 = arith.constant 0 : index
    %2 = vector.load %arg5[%c0_3, %c0_4] : memref<1x32xf32, #tpu.memory_space<vmem>>, vector<1x32xf32>
    %c0_5 = arith.constant 0 : index
    %c0_6 = arith.constant 0 : index
    %3 = vector.load %arg6[%c0_5, %c0_6] : memref<1x32xf32, #tpu.memory_space<vmem>>, vector<1x32xf32>
    %4 = tpu.iota {dimensions = array<i32: 1>} : vector<8x32xi32>
    %5 = vector.broadcast %0 : vector<8x1xi32> to vector<8x32xi32>
    %6 = arith.cmpi eq, %4, %5 : vector<8x32xi32>
    %7 = arith.extui %6 : vector<8x32xi1> to vector<8x32xi32>
    %8 = arith.sitofp %7 : vector<8x32xi32> to vector<8x32xf32>
    %9 = vector.broadcast %1 : vector<1x32xf32> to vector<8x32xf32>
    %10 = arith.mulf %8, %9 : vector<8x32xf32>
    %11 = vector.broadcast %2 : vector<1x32xf32> to vector<8x32xf32>
    %12 = arith.mulf %8, %11 : vector<8x32xf32>
    %13 = vector.shape_cast %12 : vector<8x32xf32> to vector<1x8x32xf32>
    %cst = arith.constant dense<0.000000e+00> : vector<1xf32>
    %14 = vector.multi_reduction <add>, %13, %cst [1, 2] : vector<1x8x32xf32> to vector<1xf32>
    %15 = vector.shape_cast %14 : vector<1xf32> to vector<1x1x1xf32>
    %16 = vector.extract %15[0, 0, 0] : f32 from vector<1x1x1xf32>
    %c0_7 = arith.constant 0 : index
    %c0_8 = arith.constant 0 : index
    %17 = vector.load %arg2[%c0_7, %c0_8] : memref<8x32xf32, #tpu.memory_space<vmem>>, vector<8x32xf32>
    %18 = vector.broadcast %3 : vector<1x32xf32> to vector<8x32xf32>
    %19 = arith.mulf %17, %18 : vector<8x32xf32>
    %cst_9 = arith.constant dense<0xFF800000> : vector<8xf32>
    %20 = vector.multi_reduction <maximumf>, %19, %cst_9 [1] : vector<8x32xf32> to vector<8xf32>
    %21 = vector.shape_cast %20 : vector<8xf32> to vector<8x1xf32>
    %22 = vector.broadcast %21 : vector<8x1xf32> to vector<8x32xf32>
    %23 = arith.subf %19, %22 : vector<8x32xf32>
    %24 = math.exp %23 : vector<8x32xf32>
    %cst_10 = arith.constant dense<0.000000e+00> : vector<8xf32>
    %25 = vector.multi_reduction <add>, %24, %cst_10 [1] : vector<8x32xf32> to vector<8xf32>
    %26 = vector.shape_cast %25 : vector<8xf32> to vector<8x1xf32>
    %27 = math.log %26 : vector<8x1xf32>
    %28 = arith.addf %21, %27 : vector<8x1xf32>
    %cst_11 = arith.constant 1.000000e+00 : f32
    %29 = vector.broadcast %cst_11 : f32 to vector<8x1xf32>
    %30 = arith.divf %29, %26 : vector<8x1xf32>
    %31 = vector.broadcast %30 : vector<8x1xf32> to vector<8x32xf32>
    %32 = arith.mulf %24, %31 : vector<8x32xf32>
    %33 = vector.broadcast %28 : vector<8x1xf32> to vector<8x32xf32>
    %34 = arith.subf %19, %33 : vector<8x32xf32>
    %35 = arith.mulf %32, %34 : vector<8x32xf32>
    %36 = vector.shape_cast %35 : vector<8x32xf32> to vector<1x8x32xf32>
    %cst_12 = arith.constant dense<0.000000e+00> : vector<1xf32>
    %37 = vector.multi_reduction <add>, %36, %cst_12 [1, 2] : vector<1x8x32xf32> to vector<1xf32>
    %38 = vector.shape_cast %37 : vector<1xf32> to vector<1x1x1xf32>
    %39 = vector.extract %38[0, 0, 0] : f32 from vector<1x1x1xf32>
    %cst_13 = arith.constant dense<0.000000e+00> : vector<8xf32>
    %40 = vector.multi_reduction <add>, %32, %cst_13 [1] : vector<8x32xf32> to vector<8xf32>
    %41 = vector.shape_cast %40 : vector<8xf32> to vector<8x1xf32>
    %c0_14 = arith.constant 0 : index
    %c0_15 = arith.constant 0 : index
    %42 = vector.load %arg3[%c0_14, %c0_15] : memref<8x32xf32, #tpu.memory_space<vmem>>, vector<8x32xf32>
    %cst_16 = arith.constant 1.000000e+00 : f32
    %43 = vector.broadcast %cst_16 : f32 to vector<8x32xf32>
    %44 = arith.mulf %17, %43 : vector<8x32xf32>
    %cst_17 = arith.constant 1.000000e+00 : f32
    %45 = vector.broadcast %cst_17 : f32 to vector<8x32xf32>
    %46 = arith.mulf %42, %45 : vector<8x32xf32>
    %cst_18 = arith.constant dense<0xFF800000> : vector<8xf32>
    %47 = vector.multi_reduction <maximumf>, %44, %cst_18 [1] : vector<8x32xf32> to vector<8xf32>
    %48 = vector.shape_cast %47 : vector<8xf32> to vector<8x1xf32>
    %49 = vector.broadcast %48 : vector<8x1xf32> to vector<8x32xf32>
    %50 = arith.subf %44, %49 : vector<8x32xf32>
    %51 = math.exp %50 : vector<8x32xf32>
    %cst_19 = arith.constant dense<0.000000e+00> : vector<8xf32>
    %52 = vector.multi_reduction <add>, %51, %cst_19 [1] : vector<8x32xf32> to vector<8xf32>
    %53 = vector.shape_cast %52 : vector<8xf32> to vector<8x1xf32>
    %54 = math.log %53 : vector<8x1xf32>
    %55 = arith.addf %48, %54 : vector<8x1xf32>
    %cst_20 = arith.constant dense<0xFF800000> : vector<8xf32>
    %56 = vector.multi_reduction <maximumf>, %46, %cst_20 [1] : vector<8x32xf32> to vector<8xf32>
    %57 = vector.shape_cast %56 : vector<8xf32> to vector<8x1xf32>
    %58 = vector.broadcast %57 : vector<8x1xf32> to vector<8x32xf32>
    %59 = arith.subf %46, %58 : vector<8x32xf32>
    %60 = math.exp %59 : vector<8x32xf32>
    %cst_21 = arith.constant dense<0.000000e+00> : vector<8xf32>
    %61 = vector.multi_reduction <add>, %60, %cst_21 [1] : vector<8x32xf32> to vector<8xf32>
    %62 = vector.shape_cast %61 : vector<8xf32> to vector<8x1xf32>
    %63 = math.log %62 : vector<8x1xf32>
    %64 = arith.addf %57, %63 : vector<8x1xf32>
    %65 = vector.broadcast %55 : vector<8x1xf32> to vector<8x32xf32>
    %66 = arith.subf %44, %65 : vector<8x32xf32>
    %67 = vector.broadcast %64 : vector<8x1xf32> to vector<8x32xf32>
    %68 = arith.subf %46, %67 : vector<8x32xf32>
    %cst_22 = arith.constant 1.000000e+00 : f32
    %69 = vector.broadcast %cst_22 : f32 to vector<8x1xf32>
    %70 = arith.divf %69, %62 : vector<8x1xf32>
    %71 = vector.broadcast %70 : vector<8x1xf32> to vector<8x32xf32>
    %72 = arith.mulf %60, %71 : vector<8x32xf32>
    %73 = arith.subf %68, %66 : vector<8x32xf32>
    %74 = arith.mulf %72, %73 : vector<8x32xf32>
    %75 = vector.shape_cast %74 : vector<8x32xf32> to vector<1x8x32xf32>
    %cst_23 = arith.constant dense<0.000000e+00> : vector<1xf32>
    %76 = vector.multi_reduction <add>, %75, %cst_23 [1, 2] : vector<1x8x32xf32> to vector<1xf32>
    %77 = vector.shape_cast %76 : vector<1xf32> to vector<1x1x1xf32>
    %78 = vector.extract %77[0, 0, 0] : f32 from vector<1x1x1xf32>
    %c0_24 = arith.constant 0 : index
    %c0_25 = arith.constant 0 : index
    %79 = vector.load %arg7[%c0_24, %c0_25] : memref<8x32xf32, #tpu.memory_space<vmem>>, vector<8x32xf32>
    %80 = arith.subf %79, %10 : vector<8x32xf32>
    %cst_26 = arith.constant dense<0xFF800000> : vector<8xf32>
    %81 = vector.multi_reduction <maximumf>, %80, %cst_26 [1] : vector<8x32xf32> to vector<8xf32>
    %82 = vector.shape_cast %81 : vector<8xf32> to vector<8x1xf32>
    %83 = vector.broadcast %82 : vector<8x1xf32> to vector<8x32xf32>
    %84 = arith.subf %80, %83 : vector<8x32xf32>
    %85 = math.exp %84 : vector<8x32xf32>
    %cst_27 = arith.constant dense<0.000000e+00> : vector<8xf32>
    %86 = vector.multi_reduction <add>, %85, %cst_27 [1] : vector<8x32xf32> to vector<8xf32>
    %87 = vector.shape_cast %86 : vector<8xf32> to vector<8x1xf32>
    %88 = math.log %87 : vector<8x1xf32>
    %89 = arith.addf %82, %88 : vector<8x1xf32>
    %90 = vector.broadcast %89 : vector<8x1xf32> to vector<8x32xf32>
    %91 = arith.subf %90, %80 : vector<8x32xf32>
    %92 = arith.mulf %12, %91 : vector<8x32xf32>
    %93 = vector.shape_cast %92 : vector<8x32xf32> to vector<1x8x32xf32>
    %cst_28 = arith.constant dense<0.000000e+00> : vector<1xf32>
    %94 = vector.multi_reduction <add>, %93, %cst_28 [1, 2] : vector<1x8x32xf32> to vector<1xf32>
    %95 = vector.shape_cast %94 : vector<1xf32> to vector<1x1x1xf32>
    %96 = vector.extract %95[0, 0, 0] : f32 from vector<1x1x1xf32>
    %cst_29 = arith.constant 0.000000e+00 : f32
    %97 = arith.addf %cst_29, %96 : f32
    %98 = vector.broadcast %3 : vector<1x32xf32> to vector<8x32xf32>
    %99 = arith.mulf %79, %98 : vector<8x32xf32>
    %cst_30 = arith.constant dense<0xFF800000> : vector<8xf32>
    %100 = vector.multi_reduction <maximumf>, %99, %cst_30 [1] : vector<8x32xf32> to vector<8xf32>
    %101 = vector.shape_cast %100 : vector<8xf32> to vector<8x1xf32>
    %102 = vector.broadcast %101 : vector<8x1xf32> to vector<8x32xf32>
    %103 = arith.subf %99, %102 : vector<8x32xf32>
    %104 = math.exp %103 : vector<8x32xf32>
    %cst_31 = arith.constant dense<0.000000e+00> : vector<8xf32>
    %105 = vector.multi_reduction <add>, %104, %cst_31 [1] : vector<8x32xf32> to vector<8xf32>
    %106 = vector.shape_cast %105 : vector<8xf32> to vector<8x1xf32>
    %107 = math.log %106 : vector<8x1xf32>
    %108 = arith.addf %101, %107 : vector<8x1xf32>
    %109 = arith.mulf %32, %99 : vector<8x32xf32>
    %110 = vector.shape_cast %109 : vector<8x32xf32> to vector<1x8x32xf32>
    %cst_32 = arith.constant dense<0.000000e+00> : vector<1xf32>
    %111 = vector.multi_reduction <add>, %110, %cst_32 [1, 2] : vector<1x8x32xf32> to vector<1xf32>
    %112 = vector.shape_cast %111 : vector<1xf32> to vector<1x1x1xf32>
    %113 = vector.extract %112[0, 0, 0] : f32 from vector<1x1x1xf32>
    %114 = arith.subf %39, %113 : f32
    %115 = arith.mulf %108, %41 : vector<8x1xf32>
    %116 = vector.shape_cast %115 : vector<8x1xf32> to vector<1x8x1xf32>
    %cst_33 = arith.constant dense<0.000000e+00> : vector<1xf32>
    %117 = vector.multi_reduction <add>, %116, %cst_33 [1, 2] : vector<1x8x1xf32> to vector<1xf32>
    %118 = vector.shape_cast %117 : vector<1xf32> to vector<1x1x1xf32>
    %119 = vector.extract %118[0, 0, 0] : f32 from vector<1x1x1xf32>
    %120 = arith.addf %114, %119 : f32
    %cst_34 = arith.constant 0.000000e+00 : f32
    %121 = arith.addf %cst_34, %120 : f32
    %c0_35 = arith.constant 0 : index
    %c0_36 = arith.constant 0 : index
    %122 = vector.load %arg8[%c0_35, %c0_36] : memref<8x32xf32, #tpu.memory_space<vmem>>, vector<8x32xf32>
    %123 = arith.subf %122, %10 : vector<8x32xf32>
    %cst_37 = arith.constant dense<0xFF800000> : vector<8xf32>
    %124 = vector.multi_reduction <maximumf>, %123, %cst_37 [1] : vector<8x32xf32> to vector<8xf32>
    %125 = vector.shape_cast %124 : vector<8xf32> to vector<8x1xf32>
    %126 = vector.broadcast %125 : vector<8x1xf32> to vector<8x32xf32>
    %127 = arith.subf %123, %126 : vector<8x32xf32>
    %128 = math.exp %127 : vector<8x32xf32>
    %cst_38 = arith.constant dense<0.000000e+00> : vector<8xf32>
    %129 = vector.multi_reduction <add>, %128, %cst_38 [1] : vector<8x32xf32> to vector<8xf32>
    %130 = vector.shape_cast %129 : vector<8xf32> to vector<8x1xf32>
    %131 = math.log %130 : vector<8x1xf32>
    %132 = arith.addf %125, %131 : vector<8x1xf32>
    %133 = vector.broadcast %132 : vector<8x1xf32> to vector<8x32xf32>
    %134 = arith.subf %133, %123 : vector<8x32xf32>
    %135 = arith.mulf %12, %134 : vector<8x32xf32>
    %136 = vector.shape_cast %135 : vector<8x32xf32> to vector<1x8x32xf32>
    %cst_39 = arith.constant dense<0.000000e+00> : vector<1xf32>
    %137 = vector.multi_reduction <add>, %136, %cst_39 [1, 2] : vector<1x8x32xf32> to vector<1xf32>
    %138 = vector.shape_cast %137 : vector<1xf32> to vector<1x1x1xf32>
    %139 = vector.extract %138[0, 0, 0] : f32 from vector<1x1x1xf32>
    %140 = arith.addf %97, %139 : f32
    %141 = vector.broadcast %3 : vector<1x32xf32> to vector<8x32xf32>
    %142 = arith.mulf %122, %141 : vector<8x32xf32>
    %cst_40 = arith.constant dense<0xFF800000> : vector<8xf32>
    %143 = vector.multi_reduction <maximumf>, %142, %cst_40 [1] : vector<8x32xf32> to vector<8xf32>
    %144 = vector.shape_cast %143 : vector<8xf32> to vector<8x1xf32>
    %145 = vector.broadcast %144 : vector<8x1xf32> to vector<8x32xf32>
    %146 = arith.subf %142, %145 : vector<8x32xf32>
    %147 = math.exp %146 : vector<8x32xf32>
    %cst_41 = arith.constant dense<0.000000e+00> : vector<8xf32>
    %148 = vector.multi_reduction <add>, %147, %cst_41 [1] : vector<8x32xf32> to vector<8xf32>
    %149 = vector.shape_cast %148 : vector<8xf32> to vector<8x1xf32>
    %150 = math.log %149 : vector<8x1xf32>
    %151 = arith.addf %144, %150 : vector<8x1xf32>
    %152 = arith.mulf %32, %142 : vector<8x32xf32>
    %153 = vector.shape_cast %152 : vector<8x32xf32> to vector<1x8x32xf32>
    %cst_42 = arith.constant dense<0.000000e+00> : vector<1xf32>
    %154 = vector.multi_reduction <add>, %153, %cst_42 [1, 2] : vector<1x8x32xf32> to vector<1xf32>
    %155 = vector.shape_cast %154 : vector<1xf32> to vector<1x1x1xf32>
    %156 = vector.extract %155[0, 0, 0] : f32 from vector<1x1x1xf32>
    %157 = arith.subf %39, %156 : f32
    %158 = arith.mulf %151, %41 : vector<8x1xf32>
    %159 = vector.shape_cast %158 : vector<8x1xf32> to vector<1x8x1xf32>
    %cst_43 = arith.constant dense<0.000000e+00> : vector<1xf32>
    %160 = vector.multi_reduction <add>, %159, %cst_43 [1, 2] : vector<1x8x1xf32> to vector<1xf32>
    %161 = vector.shape_cast %160 : vector<1xf32> to vector<1x1x1xf32>
    %162 = vector.extract %161[0, 0, 0] : f32 from vector<1x1x1xf32>
    %163 = arith.addf %157, %162 : f32
    %164 = arith.addf %121, %163 : f32
    %c0_44 = arith.constant 0 : index
    %c0_45 = arith.constant 0 : index
    %165 = vector.load %arg9[%c0_44, %c0_45] : memref<8x32xf32, #tpu.memory_space<vmem>>, vector<8x32xf32>
    %166 = arith.subf %165, %10 : vector<8x32xf32>
    %cst_46 = arith.constant dense<0xFF800000> : vector<8xf32>
    %167 = vector.multi_reduction <maximumf>, %166, %cst_46 [1] : vector<8x32xf32> to vector<8xf32>
    %168 = vector.shape_cast %167 : vector<8xf32> to vector<8x1xf32>
    %169 = vector.broadcast %168 : vector<8x1xf32> to vector<8x32xf32>
    %170 = arith.subf %166, %169 : vector<8x32xf32>
    %171 = math.exp %170 : vector<8x32xf32>
    %cst_47 = arith.constant dense<0.000000e+00> : vector<8xf32>
    %172 = vector.multi_reduction <add>, %171, %cst_47 [1] : vector<8x32xf32> to vector<8xf32>
    %173 = vector.shape_cast %172 : vector<8xf32> to vector<8x1xf32>
    %174 = math.log %173 : vector<8x1xf32>
    %175 = arith.addf %168, %174 : vector<8x1xf32>
    %176 = vector.broadcast %175 : vector<8x1xf32> to vector<8x32xf32>
    %177 = arith.subf %176, %166 : vector<8x32xf32>
    %178 = arith.mulf %12, %177 : vector<8x32xf32>
    %179 = vector.shape_cast %178 : vector<8x32xf32> to vector<1x8x32xf32>
    %cst_48 = arith.constant dense<0.000000e+00> : vector<1xf32>
    %180 = vector.multi_reduction <add>, %179, %cst_48 [1, 2] : vector<1x8x32xf32> to vector<1xf32>
    %181 = vector.shape_cast %180 : vector<1xf32> to vector<1x1x1xf32>
    %182 = vector.extract %181[0, 0, 0] : f32 from vector<1x1x1xf32>
    %183 = arith.addf %140, %182 : f32
    %184 = vector.broadcast %3 : vector<1x32xf32> to vector<8x32xf32>
    %185 = arith.mulf %165, %184 : vector<8x32xf32>
    %cst_49 = arith.constant dense<0xFF800000> : vector<8xf32>
    %186 = vector.multi_reduction <maximumf>, %185, %cst_49 [1] : vector<8x32xf32> to vector<8xf32>
    %187 = vector.shape_cast %186 : vector<8xf32> to vector<8x1xf32>
    %188 = vector.broadcast %187 : vector<8x1xf32> to vector<8x32xf32>
    %189 = arith.subf %185, %188 : vector<8x32xf32>
    %190 = math.exp %189 : vector<8x32xf32>
    %cst_50 = arith.constant dense<0.000000e+00> : vector<8xf32>
    %191 = vector.multi_reduction <add>, %190, %cst_50 [1] : vector<8x32xf32> to vector<8xf32>
    %192 = vector.shape_cast %191 : vector<8xf32> to vector<8x1xf32>
    %193 = math.log %192 : vector<8x1xf32>
    %194 = arith.addf %187, %193 : vector<8x1xf32>
    %195 = arith.mulf %32, %185 : vector<8x32xf32>
    %196 = vector.shape_cast %195 : vector<8x32xf32> to vector<1x8x32xf32>
    %cst_51 = arith.constant dense<0.000000e+00> : vector<1xf32>
    %197 = vector.multi_reduction <add>, %196, %cst_51 [1, 2] : vector<1x8x32xf32> to vector<1xf32>
    %198 = vector.shape_cast %197 : vector<1xf32> to vector<1x1x1xf32>
    %199 = vector.extract %198[0, 0, 0] : f32 from vector<1x1x1xf32>
    %200 = arith.subf %39, %199 : f32
    %201 = arith.mulf %194, %41 : vector<8x1xf32>
    %202 = vector.shape_cast %201 : vector<8x1xf32> to vector<1x8x1xf32>
    %cst_52 = arith.constant dense<0.000000e+00> : vector<1xf32>
    %203 = vector.multi_reduction <add>, %202, %cst_52 [1, 2] : vector<1x8x1xf32> to vector<1xf32>
    %204 = vector.shape_cast %203 : vector<1xf32> to vector<1x1x1xf32>
    %205 = vector.extract %204[0, 0, 0] : f32 from vector<1x1x1xf32>
    %206 = arith.addf %200, %205 : f32
    %207 = arith.addf %164, %206 : f32
    %208 = tpu.iota {dimensions = array<i32: 0>} : vector<8x128xi32>
    %209 = tpu.iota {dimensions = array<i32: 1>} : vector<8x128xi32>
    %cst_53 = arith.constant 0.000000e+00 : f32
    %210 = vector.broadcast %cst_53 : f32 to vector<8x128xf32>
    %c0_i32 = arith.constant 0 : i32
    %211 = vector.broadcast %c0_i32 : i32 to vector<8x128xi32>
    %212 = arith.cmpi eq, %208, %211 : vector<8x128xi32>
    %c0_i32_54 = arith.constant 0 : i32
    %213 = vector.broadcast %c0_i32_54 : i32 to vector<8x128xi32>
    %214 = arith.cmpi eq, %209, %213 : vector<8x128xi32>
    %215 = arith.andi %212, %214 : vector<8x128xi1>
    %216 = vector.broadcast %183 : f32 to vector<8x128xf32>
    %217 = arith.select %215, %216, %210 : vector<8x128xi1>, vector<8x128xf32>
    %c0_i32_55 = arith.constant 0 : i32
    %218 = vector.broadcast %c0_i32_55 : i32 to vector<8x128xi32>
    %219 = arith.cmpi eq, %208, %218 : vector<8x128xi32>
    %c1_i32 = arith.constant 1 : i32
    %220 = vector.broadcast %c1_i32 : i32 to vector<8x128xi32>
    %221 = arith.cmpi eq, %209, %220 : vector<8x128xi32>
    %222 = arith.andi %219, %221 : vector<8x128xi1>
    %223 = vector.broadcast %207 : f32 to vector<8x128xf32>
    %224 = arith.select %222, %223, %217 : vector<8x128xi1>, vector<8x128xf32>
    %c0_i32_56 = arith.constant 0 : i32
    %225 = vector.broadcast %c0_i32_56 : i32 to vector<8x128xi32>
    %226 = arith.cmpi eq, %208, %225 : vector<8x128xi32>
    %c2_i32 = arith.constant 2 : i32
    %227 = vector.broadcast %c2_i32 : i32 to vector<8x128xi32>
    %228 = arith.cmpi eq, %209, %227 : vector<8x128xi32>
    %229 = arith.andi %226, %228 : vector<8x128xi1>
    %230 = vector.broadcast %16 : f32 to vector<8x128xf32>
    %231 = arith.select %229, %230, %224 : vector<8x128xi1>, vector<8x128xf32>
    %c0_i32_57 = arith.constant 0 : i32
    %232 = vector.broadcast %c0_i32_57 : i32 to vector<8x128xi32>
    %233 = arith.cmpi eq, %208, %232 : vector<8x128xi32>
    %c3_i32 = arith.constant 3 : i32
    %234 = vector.broadcast %c3_i32 : i32 to vector<8x128xi32>
    %235 = arith.cmpi eq, %209, %234 : vector<8x128xi32>
    %236 = arith.andi %233, %235 : vector<8x128xi1>
    %237 = vector.broadcast %78 : f32 to vector<8x128xf32>
    %238 = arith.select %236, %237, %231 : vector<8x128xi1>, vector<8x128xf32>
    %c0_58 = arith.constant 0 : index
    %c0_59 = arith.constant 0 : index
    %c0_60 = arith.constant 0 : index
    %239 = vector.load %arg10[%c0_58, %c0_59, %c0_60] : memref<1x8x128xf32, #tpu.memory_space<vmem>>, vector<1x8x128xf32>
    %240 = vector.shape_cast %239 : vector<1x8x128xf32> to vector<8x128xf32>
    %241 = vector.shape_cast %238 : vector<8x128xf32> to vector<1x8x128xf32>
    tpu.vector_store %arg10[%c0_58, %c0_59, %c0_60], %241 {strides = array<i32>} : memref<1x8x128xf32, #tpu.memory_space<vmem>>, vector<1x8x128xf32>,
    return
  }
  func.func @transform_0(%arg0: i32) -> (i32, i32) {
    %c0_i32 = arith.constant 0 : i32
    %c0_i32_0 = arith.constant 0 : i32
    return %arg0, %c0_i32 : i32, i32
  }
  func.func @transform_1(%arg0: i32) -> (i32, i32) {
    %c0_i32 = arith.constant 0 : i32
    %c0_i32_0 = arith.constant 0 : i32
    return %arg0, %c0_i32 : i32, i32
  }
  func.func @transform_2(%arg0: i32) -> (i32, i32) {
    %c0_i32 = arith.constant 0 : i32
    %c0_i32_0 = arith.constant 0 : i32
    return %arg0, %c0_i32 : i32, i32
  }
  func.func @transform_3(%arg0: i32) -> (i32, i32) {
    %c0_i32 = arith.constant 0 : i32
    %c0_i32_0 = arith.constant 0 : i32
    %c0_i32_1 = arith.constant 0 : i32
    return %c0_i32, %c0_i32_0 : i32, i32
  }
  func.func @transform_4(%arg0: i32) -> (i32, i32) {
    %c0_i32 = arith.constant 0 : i32
    %c0_i32_0 = arith.constant 0 : i32
    %c0_i32_1 = arith.constant 0 : i32
    return %c0_i32, %c0_i32_0 : i32, i32
  }
  func.func @transform_5(%arg0: i32) -> (i32, i32) {
    %c0_i32 = arith.constant 0 : i32
    %c0_i32_0 = arith.constant 0 : i32
    %c0_i32_1 = arith.constant 0 : i32
    return %c0_i32, %c0_i32_0 : i32, i32
  }
  func.func @transform_6(%arg0: i32) -> (i32, i32) {
    %c0_i32 = arith.constant 0 : i32
    %c0_i32_0 = arith.constant 0 : i32
    return %arg0, %c0_i32 : i32, i32
  }
  func.func @transform_7(%arg0: i32) -> (i32, i32) {
    %c0_i32 = arith.constant 0 : i32
    %c0_i32_0 = arith.constant 0 : i32
    return %arg0, %c0_i32 : i32, i32
  }
  func.func @transform_8(%arg0: i32) -> (i32, i32) {
    %c0_i32 = arith.constant 0 : i32
    %c0_i32_0 = arith.constant 0 : i32
    return %arg0, %c0_i32 : i32, i32
  }
  func.func @transform_9(%arg0: i32) -> (i32, i32, i32) {
    %c0_i32 = arith.constant 0 : i32
    %c0_i32_0 = arith.constant 0 : i32
    %c0_i32_1 = arith.constant 0 : i32
    return %arg0, %c0_i32, %c0_i32_0 : i32, i32, i32
  }
}

</mosaic_0001>

<bundles_post_ra>
// kernel: tpu_custom_call.1
= control target key start
LH: loop header
LB: loop body
LE: loop exit
PB: predicated region body
PF: predicated region fallthrough
CT: control target
= control target key end

     0   :  { %14 = vsyncpa [#allocation3], 0  ;;  %s884_s0 = inlined_call_operand.vmem [shape: s32[8,1], index: 0, kind: input, shape index: {}]   ;;  %s885_s1 = inlined_call_operand.vmem [shape: f32[8,32], index: 1, kind: input, shape index: {}]   ;;  %s886_s2 = inlined_call_operand.hbm [shape: f32[8,32], index: 2, kind: input, shape index: {}]   ;;  %s887_s3 = inlined_call_operand.hbm [shape: f32[1,32], index: 3, kind: input, shape index: {}]   ;;  %s888_s4 = inlined_call_operand.hbm [shape: f32[1,32], index: 4, kind: input, shape index: {}]   ;;  %s889_s5 = inlined_call_operand.vmem [shape: f32[1,32], index: 5, kind: input, shape index: {}]   ;;  %s890_s6 = inlined_call_operand.vmem [shape: f32[8,32], index: 6, kind: input, shape index: {}]   ;;  %s891_s7 = inlined_call_operand.hbm [shape: f32[8,32], index: 7, kind: input, shape index: {}]   ;;  %s892_s8 = inlined_call_operand.hbm [shape: f32[8,32], index: 8, kind: input, shape index: {}]   ;;  %s893_s9 = inlined_call_operand.hbm [shape: f32[1,8,128], index: 9, kind: output, shape index: {}]  }
   0x1   :  { %15 = vsyncpa [#allocation6], 0 }
   0x2   :  { %16 = vsyncpa [#allocation9], 0 }
   0x3   :  { %17 = vsyncpa [#allocation4], 0  ;;  %s646_s30 = smov [#allocation5]   ;;  %s647_s11 = smov [#allocation8]  }
   0x4   :  { %s38_s10 = sshll.u32 %s646_s30, 4  ;;  %s62_s12 = sshll.u32 %s647_s11, 4  ;;  %s39_s10 = int_to_ptr.vmem [resolvable:$true] %s38_s10  ;;  %s63_s12 = int_to_ptr.vmem [resolvable:$true] %s62_s12 }
   0x5   :  { %s526_s13 = scalar_lea.vmem %s39_s10, 16  ;;  %s530_s14 = scalar_lea.vmem %s39_s10, 32 }
   0x6   :  { %p527_p0 = scmp.ne.s32.totalorder %s39_s10, %s526_s13  ;;  %p531_p1 = scmp.lt.s32.totalorder %s39_s10, %s39_s10 }
   0x7   :  { %p532_p2 = scmp.lt.s32.totalorder %s530_s14, %s526_s13 }
   0x9   :  { %p533_p3 = por %p532_p2, %p531_p1 }
   0xb   :  { %p534_p4 = pnand %p533_p3, %p527_p0 }
   0xd   :  { %537 = shalt.err (!%p534_p4)
}
   0xe   :  { %41 = dma.hbm_to_vmem [thread:$0]  %s887_s3, 16, %s39_s10, [#allocation6]  }
   0xf   :  { %s546_s17 = scalar_lea.vmem %s63_s12, 128  ;;  %p551_p6 = scmp.lt.s32.totalorder %s63_s12, %s63_s12 }
  0x10   :  { %p547_p5 = scmp.ne.s32.totalorder %s63_s12, %s546_s17  ;;  %p552_p7 = scmp.lt.s32.totalorder %s546_s17, %s546_s17 }
  0x12   :  { %p553_p8 = por %p552_p7, %p551_p6 }
  0x14   :  { %p554_p9 = pnand %p553_p8, %p547_p5 }
  0x16   :  { %557 = shalt.err (!%p554_p9)
}
  0x17   :  { %65 = dma.hbm_to_vmem [thread:$0]  %s891_s7, 128, %s63_s12, [#allocation9]  }
  0x18   :  { %s648_s20 = smov [#allocation2]   ;;  %s649_s22 = smov [#allocation7]  }
  0x19   :  { %s28_s21 = sshll.u32 %s648_s20, 4  ;;  %s48_s23 = sshll.u32 %s649_s22, 4  ;;  %s29_s21 = int_to_ptr.vmem [resolvable:$true] %s28_s21  ;;  %s49_s23 = int_to_ptr.vmem [resolvable:$true] %s48_s23 }
  0x1a   :  { %s566_s24 = scalar_lea.vmem %s29_s21, 128  ;;  %p571_p11 = scmp.lt.s32.totalorder %s29_s21, %s29_s21 }
  0x1b   :  { %p567_p10 = scmp.ne.s32.totalorder %s29_s21, %s566_s24  ;;  %p572_p12 = scmp.lt.s32.totalorder %s566_s24, %s566_s24 }
  0x1d   :  { %p573_p13 = por %p572_p12, %p571_p11 }
  0x1f   :  { %p574_p0 = pnand %p573_p13, %p567_p10 }
  0x21   :  { %577 = shalt.err (!%p574_p0)
}
  0x22   :  { %31 = dma.hbm_to_vmem [thread:$0]  %s886_s2, 128, %s29_s21, [#allocation3]  }
  0x23   :  { %s586_s26 = scalar_lea.vmem %s49_s23, 16  ;;  %s590_s7 = scalar_lea.vmem %s49_s23, 32 }
  0x24   :  { %p587_p1 = scmp.ne.s32.totalorder %s49_s23, %s586_s26  ;;  %p591_p2 = scmp.lt.s32.totalorder %s49_s23, %s49_s23 }
  0x25   :  { %p592_p3 = scmp.lt.s32.totalorder %s590_s7, %s586_s26 }
  0x27   :  { %p593_p4 = por %p592_p3, %p591_p2 }
  0x29   :  { %p594_p5 = pnand %p593_p4, %p587_p1 }
  0x2b   :  { %597 = shalt.err (!%p594_p5)
}
  0x2c   :  { %51 = dma.hbm_to_vmem [thread:$0]  %s888_s4, 16, %s49_s23, [#allocation6]  }
  0x2d   :  { %s650_s29 = smov [#allocation10]  }
  0x2e   :  { %s72_s30 = sshll.u32 %s650_s29, 4  ;;  %s73_s30 = int_to_ptr.vmem [resolvable:$true] %s72_s30 }
  0x2f   :  { %s606_s10 = scalar_lea.vmem %s73_s30, 128  ;;  %p611_p7 = scmp.lt.s32.totalorder %s73_s30, %s73_s30 }
  0x30   :  { %p607_p6 = scmp.ne.s32.totalorder %s73_s30, %s606_s10  ;;  %p612_p8 = scmp.lt.s32.totalorder %s606_s10, %s606_s10 }
  0x32   :  { %p613_p9 = por %p612_p8, %p611_p7 }
  0x34   :  { %p614_p10 = pnand %p613_p9, %p607_p6 }
  0x36   :  { %617 = shalt.err (!%p614_p10)
}
  0x37   :  { %75 = dma.hbm_to_vmem [thread:$0]  %s892_s8, 128, %s73_s30, [#allocation9]  }
  0x38   :  { %638 = dma.done.wait [#allocation3], 128  }
  0x39   :  { %639 = vsyncadd [#allocation3], 4294967168 }
  0x3a   :  { %640 = dma.done.wait [#allocation6], 32  }
  0x3b   :  { %641 = vsyncadd [#allocation6], 4294967264 }
  0x3c   :  { %642 = dma.done.wait [#allocation9], 256  }
  0x3d   :  { %643 = vsyncadd [#allocation9], 4294967040  ;;  %v651_v0 = vmov 0   ;;  %vm117_vm0 = vcmask 261120   ;;  %v91_v1 = vld [vmem:[%s884_s0] sm:$0xff]  ;;  %v274_v9 = vld [vmem:[#allocation8] sm:$0xff]  ;;  %v95_v15 = vlaneseq }
  0x3e   :  { %477 = vset.pattern.permute.xlu0 %v651_v0  ;;  %v725_v2 = vld [vmem:[%s885_s1] sm:$0xff]  ;;  %v442_v17 = vld [vmem:[#allocation5] ss:$0 sm:$0xff]  ;;  %v652_v19 = vmov 0.0   ;;  %v339_v25 = vld [vmem:[#allocation10] sm:$0xff]  ;;  %vm261_vm2 = vcmask 7168  }
  0x3f   :  { %v727_v3 = vld [vmem:[#allocation2] sm:$0xff]  ;;  %98 = vperm.xlu0 %477, %v91_v1   ;;  %v167_v4 = vsel %vm117_vm0, %v725_v2, -inf  ;;  %v753_v16 = vand.u32 127, %v95_v15  ;;  %s653_s4 = smov [#allocation11]  }
  0x40   :  { %v444_v5 = vld [vmem:[%s889_s5] ss:$0 sm:$0xff]  ;;  %168 = vmax.xlane.f32.xlu1 %v167_v4  ;;  %v179_v7 = vsel %vm117_vm0, %v727_v3, -inf  ;;  %s430_s12 = sshll.u32 %s653_s4, 4  ;;  %s431_s12 = int_to_ptr.vmem [resolvable:$true] %s430_s12 }
  0x41   :  { %v208_v6 = vld [vmem:[%s890_s6] sm:$0xff]  ;;  %v743_v11 = vmul.f32 %v444_v5, %v274_v9  ;;  %v748_v13 = vmul.f32 %v444_v5, %v725_v2  ;;  %v769_v28 = vmul.f32 %v444_v5, %v339_v25  ;;  %vm407_vm4 = vcmp.eq.s32.totalorder %v753_v16, 0  ;;  %s618_s13 = scalar_lea.vmem %s431_s12, 128  ;;  %p623_p12 = scmp.lt.s32.totalorder %s431_s12, %s431_s12 }
  0x42   :  { %v739_v8 = vmul.f32 %v444_v5, %v208_v6  ;;  %vm411_vm5 = vcmp.eq.s32.totalorder %v753_v16, 1  ;;  %vm415_vm6 = vcmp.eq.s32.totalorder %v753_v16, 2  ;;  %vm419_vm8 = vcmp.eq.s32.totalorder %v753_v16, 3  ;;  %p619_p11 = scmp.ne.s32.totalorder %s431_s12, %s618_s13  ;;  %p624_p13 = scmp.lt.s32.totalorder %s618_s13, %s618_s13 }
  0x43   :  { %v302_v12 = vsel %vm117_vm0, %v743_v11, -inf  ;;  %v136_v14 = vsel %vm117_vm0, %v748_v13, -inf  ;;  %v367_v32 = vsel %vm117_vm0, %v769_v28, -inf }
  0x44   :  { %180 = vmax.xlane.f32.xlu1 %v179_v7  ;;  %v236_v10 = vsel %vm117_vm0, %v739_v8, -inf  ;;  %p625_p0 = por %p624_p13, %p623_p12 }
  0x46   :  { %p626_p1 = pnand %p625_p0, %p619_p11 }
  0x48   :  { %237 = vmax.xlane.f32.xlu1 %v236_v10 }
  0x4c   :  { %303 = vmax.xlane.f32.xlu1 %v302_v12 }
  0x5e   :  { %137 = vmax.xlane.f32.xlu0 %v136_v14 }
  0xba   :  { %v99_v18 = vpop.permute.xlu0 %98 }
  0xbb   :  { %vm100_vm1 = vcmp.eq.s32.totalorder %v753_v16, %v99_v18 }
  0xbc   :  { %v756_v20 = vsel %vm100_vm1, 1.0, %v652_v19 }
  0xbd   :  { %v109_v21 = vmul.f32 %v442_v17, %v756_v20  ;;  %v443_v17 = vld [vmem:[#allocation7] ss:$0 sm:$0xff] }
  0xbe   :  { %v823_v19 = vmul.f32 %v443_v17, %v756_v20 }
  0xbf   :  { %v759_v22 = vsub.f32 %v208_v6, %v109_v21  ;;  %v763_v24 = vsub.f32 %v274_v9, %v109_v21  ;;  %v767_v27 = vsub.f32 %v339_v25, %v109_v21 }
  0xc1   :  { %v210_v23 = vsel %vm117_vm0, %v759_v22, -inf  ;;  %v276_v26 = vsel %vm117_vm0, %v763_v24, -inf  ;;  %v341_v30 = vsel %vm117_vm0, %v767_v27, -inf }
  0xc2   :  { %211 = vmax.xlane.f32.xlu1 %v210_v23  ;;  %v118_v23 = vsel %vm117_vm0, %v823_v19, 0.0 }
  0xc6   :  { %277 = vmax.xlane.f32.xlu1 %v276_v26 }
  0xc9   :  { %v771_v29 = vpop.xlane.xlu1 %168 }
  0xca   :  { %v170_v31 = vsub.f32 %v725_v2, %v771_v29  ;;  %342 = vmax.xlane.f32.xlu1 %v341_v30 }
  0xcc   :  { %v171_v33 = vmul.f32 1.442695, %v170_v31 }
  0xcd   :  { %v779_v34 = vpop.xlane.xlu1 %180 }
  0xce   :  { %478 = vpow2.f32 %v171_v33  ;;  %368 = vmax.xlane.f32.xlu1 %v367_v32  ;;  %v182_v41 = vsub.f32 %v727_v3, %v779_v34 }
  0xd0   :  { %v183_v43 = vmul.f32 1.442695, %v182_v41 }
  0xd1   :  { %v781_v35 = vpop.xlane.xlu1 %237 }
  0xd2   :  { %v239_v36 = vsub.f32 %v739_v8, %v781_v35 }
  0xd4   :  { %v240_v37 = vmul.f32 1.442695, %v239_v36 }
  0xd5   :  { %v798_v51 = vpop.xlane.xlu1 %303 }
  0xd6   :  { %480 = vpow2.f32 %v240_v37  ;;  %v305_v52 = vsub.f32 %v743_v11, %v798_v51 }
  0xd7   :  { %482 = vpow2.f32 %v183_v43 }
  0xd8   :  { %v306_v53 = vmul.f32 1.442695, %v305_v52 }
  0xdb   :  { %v479_v38 = vpop.eup %478 }
  0xdc   :  { %v173_v39 = vsel %vm117_vm0, %v479_v38, 0.0 }
  0xdd   :  { %174 = vadd.xlane.f32.xlu0 %v173_v39 }
  0xe3   :  { %v481_v40 = vpop.eup %480 }
  0xe4   :  { %v242_v42 = vsel %vm117_vm0, %v481_v40, 0.0  ;;  %v793_v47 = vpop.eup %482 }
  0xe5   :  { %243 = vadd.xlane.f32.xlu0 %v242_v42  ;;  %v185_v50 = vsel %vm117_vm0, %v793_v47, 0.0 }
  0xe7   :  { %v789_v44 = vpop.xlane.xlu0 %137 }
  0xe8   :  { %v139_v45 = vsub.f32 %v748_v13, %v789_v44 }
  0xea   :  { %v140_v46 = vmul.f32 1.442695, %v139_v45 }
  0xec   :  { %484 = vpow2.f32 %v140_v46 }
  0xed   :  { %486 = vpow2.f32 %v306_v53 }
  0xf9   :  { %v485_v48 = vpop.eup %484 }
  0xfa   :  { %v142_v49 = vsel %vm117_vm0, %v485_v48, 0.0  ;;  %v487_v4 = vpop.eup %486 }
  0xfb   :  { %143 = vadd.xlane.f32.xlu1 %v142_v49  ;;  %v308_v7 = vsel %vm117_vm0, %v487_v4, 0.0 }
  0xff   :  { %186 = vadd.xlane.f32.xlu1 %v185_v50 }
 0x14b   :  { %v802_v54 = vpop.xlane.xlu1 %211 }
 0x14c   :  { %v213_v55 = vsub.f32 %v759_v22, %v802_v54 }
 0x14e   :  { %v214_v56 = vmul.f32 1.442695, %v213_v55 }
 0x14f   :  { %v806_v57 = vpop.xlane.xlu1 %277 }
 0x150   :  { %488 = vpow2.f32 %v214_v56  ;;  %v279_v58 = vsub.f32 %v763_v24, %v806_v57 }
 0x152   :  { %v280_v59 = vmul.f32 1.442695, %v279_v58 }
 0x153   :  { %v810_v60 = vpop.xlane.xlu1 %342 }
 0x154   :  { %490 = vpow2.f32 %v280_v59  ;;  %v344_v61 = vsub.f32 %v767_v27, %v810_v60 }
 0x156   :  { %v345_v62 = vmul.f32 1.442695, %v344_v61 }
 0x157   :  { %v814_v63 = vpop.xlane.xlu1 %368 }
 0x158   :  { %492 = vpow2.f32 %v345_v62  ;;  %v370_v0 = vsub.f32 %v769_v28, %v814_v63 }
 0x15a   :  { %v371_v1 = vmul.f32 1.442695, %v370_v0 }
 0x15c   :  { %494 = vpow2.f32 %v371_v1 }
 0x15d   :  { %v489_v5 = vpop.eup %488 }
 0x15e   :  { %v216_v6 = vsel %vm117_vm0, %v489_v5, 0.0 }
 0x15f   :  { %217 = vadd.xlane.f32.xlu0 %v216_v6 }
 0x161   :  { %v491_v9 = vpop.eup %490 }
 0x162   :  { %v282_v10 = vsel %vm117_vm0, %v491_v9, 0.0 }
 0x163   :  { %309 = vadd.xlane.f32.xlu0 %v308_v7  ;;  %283 = vadd.xlane.f32.xlu1 %v282_v10 }
 0x165   :  { %v493_v12 = vpop.eup %492 }
 0x166   :  { %v347_v14 = vsel %vm117_vm0, %v493_v12, 0.0  ;;  %v175_v25 = vpop.xlane.xlu0 %174 }
 0x167   :  { %348 = vadd.xlane.f32.xlu1 %v347_v14  ;;  %496 = vlog2.f32 %v175_v25 }
 0x169   :  { %v495_v18 = vpop.eup %494 }
 0x16a   :  { %v373_v21 = vsel %vm117_vm0, %v495_v18, 0.0 }
 0x16b   :  { %374 = vadd.xlane.f32.xlu1 %v373_v21 }
 0x16e   :  { %v244_v56 = vpop.xlane.xlu0 %243 }
 0x16f   :  { %119 = vadd.xlane.f32.xlu1 %v118_v23 }
 0x174   :  { %v497_v31 = vpop.eup %496 }
 0x175   :  { %v177_v20 = vmul.f32 0.6931472, %v497_v31 }
 0x177   :  { %v178_v43 = vadd.f32 %v177_v20, %v771_v29 }
 0x184   :  { %v144_v26 = vpop.xlane.xlu1 %143 }
 0x185   :  { %498 = vlog2.f32 %v144_v26 }
 0x186   :  { %500 = vrcp.f32 %v144_v26 }
 0x188   :  { %v187_v30 = vpop.xlane.xlu1 %186 }
 0x189   :  { %502 = vlog2.f32 %v187_v30 }
 0x18a   :  { %504 = vrcp.f32 %v187_v30 }
 0x192   :  { %v499_v32 = vpop.eup %498 }
 0x193   :  { %v501_v33 = vpop.eup %500  ;;  %v146_v36 = vmul.f32 0.6931472, %v499_v32 }
 0x194   :  { %v828_v37 = vmul.f32 %v501_v33, %v485_v48 }
 0x195   :  { %v147_v38 = vadd.f32 %v146_v36, %v789_v44 }
 0x196   :  { %v503_v39 = vpop.eup %502  ;;  %v163_v40 = vsel %vm117_vm0, %v828_v37, 0.0  ;;  %v248_v41 = vmul.f32 %v739_v8, %v828_v37  ;;  %v314_v42 = vmul.f32 %v743_v11, %v828_v37  ;;  %v191_v8 = vsub.f32 %v725_v2, %v178_v43 }
 0x197   :  { %v189_v45 = vmul.f32 0.6931472, %v503_v39  ;;  %164 = vadd.xlane.f32.xlu0 %v163_v40  ;;  %v151_v46 = vsub.f32 %v748_v13, %v147_v38  ;;  %v505_v49 = vpop.eup %504 }
 0x198   :  { %v249_v48 = vsel %vm117_vm0, %v248_v41, 0.0  ;;  %v315_v50 = vsel %vm117_vm0, %v314_v42, 0.0  ;;  %v195_v29 = vmul.f32 %v505_v49, %v793_v47 }
 0x199   :  { %v190_v44 = vadd.f32 %v189_v45, %v779_v34  ;;  %250 = vadd.xlane.f32.xlu1 %v249_v48  ;;  %v152_v52 = vmul.f32 %v151_v46, %v828_v37  ;;  %v379_v48 = vmul.f32 %v769_v28, %v828_v37 }
 0x19b   :  { %316 = vadd.xlane.f32.xlu0 %v315_v50  ;;  %v192_v11 = vsub.f32 %v727_v3, %v190_v44  ;;  %v153_v13 = vsel %vm117_vm0, %v152_v52, 0.0 }
 0x19d   :  { %v196_v53 = vsub.f32 %v192_v11, %v191_v8 }
 0x19f   :  { %154 = vadd.xlane.f32.xlu0 %v153_v13  ;;  %v197_v55 = vmul.f32 %v196_v53, %v195_v29 }
 0x1a1   :  { %v198_v34 = vsel %vm117_vm0, %v197_v55, 0.0 }
 0x1a2   :  { %199 = vadd.xlane.f32.xlu1 %v198_v34 }
 0x1e8   :  { %v218_v58 = vpop.xlane.xlu0 %217 }
 0x1e9   :  { %506 = vlog2.f32 %v218_v58 }
 0x1ec   :  { %v284_v59 = vpop.xlane.xlu1 %283  ;;  %v310_v33 = vpop.xlane.xlu0 %309 }
 0x1ed   :  { %508 = vlog2.f32 %v284_v59 }
 0x1f0   :  { %v349_v61 = vpop.xlane.xlu1 %348 }
 0x1f1   :  { %510 = vlog2.f32 %v349_v61 }
 0x1f2   :  { %512 = vlog2.f32 %v244_v56 }
 0x1f3   :  { %514 = vlog2.f32 %v310_v33 }
 0x1f4   :  { %v375_v2 = vpop.xlane.xlu1 %374 }
 0x1f5   :  { %516 = vlog2.f32 %v375_v2 }
 0x1f6   :  { %v507_v62 = vpop.eup %506 }
 0x1f7   :  { %v220_v3 = vmul.f32 0.6931472, %v507_v62 }
 0x1f8   :  { %v120_v0 = vpop.xlane.xlu1 %119 }
 0x1f9   :  { %v221_v47 = vadd.f32 %v220_v3, %v802_v54  ;;  %v121_v1 = vrot.slane %v120_v0, 4 }
 0x1fa   :  { %v509_v4 = vpop.eup %508 }
 0x1fb   :  { %v286_v5 = vmul.f32 0.6931472, %v509_v4  ;;  %v122_v6 = vadd.f32 %v121_v1, %v120_v0  ;;  %v222_v7 = vsub.f32 %v221_v47, %v759_v22 }
 0x1fd   :  { %v287_v9 = vadd.f32 %v286_v5, %v806_v57  ;;  %v123_v10 = vrot.slane %v122_v6, 2  ;;  %v223_v12 = vmul.f32 %v222_v7, %v823_v19 }
 0x1fe   :  { %v511_v14 = vpop.eup %510 }
 0x1ff   :  { %v351_v17 = vmul.f32 0.6931472, %v511_v14  ;;  %v224_v18 = vsel %vm117_vm0, %v223_v12, 0.0  ;;  %v288_v21 = vsub.f32 %v287_v9, %v763_v24  ;;  %v124_v23 = vadd.f32 %v123_v10, %v122_v6  ;;  %v513_v24 = vpop.eup %512 }
 0x200   :  { %225 = vadd.xlane.f32.xlu0 %v224_v18  ;;  %v246_v36 = vmul.f32 0.6931472, %v513_v24 }
 0x201   :  { %v352_v54 = vadd.f32 %v351_v17, %v810_v60  ;;  %v289_v25 = vmul.f32 %v288_v21, %v823_v19  ;;  %v125_v26 = vrot.slane %v124_v23, 1  ;;  %v515_v60 = vpop.eup %514 }
 0x202   :  { %v517_v20 = vpop.eup %516  ;;  %v312_v38 = vmul.f32 0.6931472, %v515_v60 }
 0x203   :  { %v290_v22 = vsel %vm117_vm0, %v289_v25, 0.0  ;;  %v126_v30 = vadd.f32 %v125_v26, %v124_v23  ;;  %v353_v57 = vsub.f32 %v352_v54, %v767_v27  ;;  %v377_v39 = vmul.f32 0.6931472, %v517_v20 }
 0x204   :  { %291 = vadd.xlane.f32.xlu1 %v290_v22  ;;  %v313_v40 = vadd.f32 %v312_v38, %v798_v51  ;;  %v247_v27 = vadd.f32 %v246_v36, %v781_v35  ;;  %v380_v51 = vsel %vm117_vm0, %v379_v48, 0.0 }
 0x205   :  { %445 = vpush %v126_v30  ;;  %v354_v31 = vmul.f32 %v353_v57, %v823_v19  ;;  %v378_v43 = vadd.f32 %v377_v39, %v814_v63 }
 0x207   :  { %v355_v32 = vsel %vm117_vm0, %v354_v31, 0.0 }
 0x208   :  { %356 = vadd.xlane.f32.xlu0 %v355_v32 }
 0x220   :  { %v165_v41 = vpop.xlane.xlu0 %164 }
 0x221   :  { %v326_v19 = vmul.f32 %v313_v40, %v165_v41  ;;  %v260_v42 = vmul.f32 %v247_v27, %v165_v41  ;;  %v391_v44 = vmul.f32 %v378_v43, %v165_v41 }
 0x222   :  { %v251_v50 = vpop.xlane.xlu1 %250 }
 0x223   :  { %v327_v45 = vsel %vm261_vm2, %v326_v19, 0.0  ;;  %v262_v46 = vsel %vm261_vm2, %v260_v42, 0.0  ;;  %v392_v52 = vsel %vm261_vm2, %v391_v44, 0.0  ;;  %v252_v61 = vrot.slane %v251_v50, 4 }
 0x224   :  { %328 = vadd.xlane.f32.xlu1 %v327_v45  ;;  %263 = vadd.xlane.f32.xlu0 %v262_v46  ;;  %v317_v49 = vpop.xlane.xlu0 %316 }
 0x225   :  { %v253_v2 = vadd.f32 %v252_v61, %v251_v50  ;;  %v318_v17 = vrot.slane %v317_v49, 4 }
 0x227   :  { %v254_v62 = vrot.slane %v253_v2, 2  ;;  %v319_v23 = vadd.f32 %v318_v17, %v317_v49 }
 0x228   :  { %381 = vadd.xlane.f32.xlu1 %v380_v51  ;;  %393 = vadd.xlane.f32.xlu0 %v392_v52  ;;  %v155_v35 = vpop.xlane.xlu0 %154 }
 0x229   :  { %v156_v8 = vrot.slane %v155_v35, 4  ;;  %v255_v1 = vadd.f32 %v254_v62, %v253_v2  ;;  %v320_v26 = vrot.slane %v319_v23, 2 }
 0x22b   :  { %v157_v11 = vadd.f32 %v156_v8, %v155_v35  ;;  %v200_v29 = vpop.xlane.xlu1 %199  ;;  %v256_v6 = vrot.slane %v255_v1, 1  ;;  %v321_v39 = vadd.f32 %v320_v26, %v319_v23 }
 0x22c   :  { %v201_v63 = vrot.slane %v200_v29, 4 }
 0x22d   :  { %v158_v53 = vrot.slane %v157_v11, 2  ;;  %v257_v10 = vadd.f32 %v256_v6, %v255_v1  ;;  %v322_v49 = vrot.slane %v321_v39, 1 }
 0x22e   :  { %v202_v13 = vadd.f32 %v201_v63, %v200_v29 }
 0x22f   :  { %v159_v55 = vadd.f32 %v158_v53, %v157_v11 }
 0x230   :  { %v203_v34 = vrot.slane %v202_v13, 2 }
 0x231   :  { %v160_v28 = vrot.slane %v159_v55, 1 }
 0x232   :  { %v204_v37 = vadd.f32 %v203_v34, %v202_v13 }
 0x233   :  { %v161_v56 = vadd.f32 %v160_v28, %v159_v55  ;;  %v323_v55 = vadd.f32 %v322_v49, %v321_v39 }
 0x234   :  { %v205_v58 = vrot.slane %v204_v37, 1 }
 0x235   :  { %447 = vpush %v161_v56 }
 0x236   :  { %v206_v59 = vadd.f32 %v205_v58, %v204_v37  ;;  %s866_s0 = spop %445 }
 0x237   :  { %v417_v62 = vstv %s866_s0 }
 0x238   :  { %449 = vpush %v206_v59  ;;  %v405_v59 = vshrl.u32 %v95_v15, 7 }
 0x23a   :  { %vm406_vm3 = vcmp.eq.s32.totalorder %v405_v59, 0 }
 0x23b   :  { %vm408_vm7 = vmand %vm406_vm3, %vm407_vm4 }
 0x23c   :  { %vm412_vm9 = vmand %vm406_vm3, %vm411_vm5 }
 0x23d   :  { %vm416_vm10 = vmand %vm406_vm3, %vm415_vm6 }
 0x23e   :  { %vm420_vm11 = vmand %vm406_vm3, %vm419_vm8 }
 0x266   :  { %s448_s1 = spop %447 }
 0x269   :  { %s868_s5 = spop %449 }
 0x289   :  { %v226_v3 = vpop.xlane.xlu0 %225 }
 0x28a   :  { %v227_v0 = vrot.slane %v226_v3, 4 }
 0x28c   :  { %v228_v47 = vadd.f32 %v227_v0, %v226_v3  ;;  %v421_v0 = vstv %s868_s5 }
 0x28d   :  { %v292_v12 = vpop.xlane.xlu1 %291 }
 0x28e   :  { %v229_v4 = vrot.slane %v228_v47, 2  ;;  %v293_v18 = vrot.slane %v292_v12, 4 }
 0x290   :  { %v230_v5 = vadd.f32 %v229_v4, %v228_v47  ;;  %v294_v54 = vadd.f32 %v293_v18, %v292_v12 }
 0x291   :  { %v357_v14 = vpop.xlane.xlu0 %356 }
 0x292   :  { %v231_v7 = vrot.slane %v230_v5, 1  ;;  %v358_v21 = vrot.slane %v357_v14, 4  ;;  %v295_v22 = vrot.slane %v294_v54, 2 }
 0x294   :  { %v232_v9 = vadd.f32 %v231_v7, %v230_v5  ;;  %v359_v25 = vadd.f32 %v358_v21, %v357_v14  ;;  %v296_v38 = vadd.f32 %v295_v22, %v294_v54 }
 0x296   :  { %451 = vpush %v232_v9  ;;  %v360_v33 = vrot.slane %v359_v25, 2  ;;  %v297_v44 = vrot.slane %v296_v38, 1 }
 0x297   :  { %453 = vpush %v257_v10 }
 0x298   :  { %v361_v42 = vadd.f32 %v360_v33, %v359_v25  ;;  %v298_v53 = vadd.f32 %v297_v44, %v296_v38 }
 0x29a   :  { %v362_v63 = vrot.slane %v361_v42, 1 }
 0x29c   :  { %v363_v37 = vadd.f32 %v362_v63, %v361_v42 }
 0x2ad   :  { %v329_v30 = vpop.xlane.xlu1 %328  ;;  %v264_v57 = vpop.xlane.xlu0 %263 }
 0x2ae   :  { %v330_v31 = vrot.slane %v329_v30, 4  ;;  %v265_v32 = vrot.slane %v264_v57, 4 }
 0x2b0   :  { %v331_v24 = vadd.f32 %v330_v31, %v329_v30  ;;  %v266_v60 = vadd.f32 %v265_v32, %v264_v57 }
 0x2b1   :  { %v382_v20 = vpop.xlane.xlu1 %381  ;;  %v394_v36 = vpop.xlane.xlu0 %393 }
 0x2b2   :  { %v332_v40 = vrot.slane %v331_v24, 2  ;;  %v267_v27 = vrot.slane %v266_v60, 2  ;;  %v383_v41 = vrot.slane %v382_v20, 4  ;;  %v395_v19 = vrot.slane %v394_v36, 4 }
 0x2b4   :  { %v384_v43 = vadd.f32 %v383_v41, %v382_v20  ;;  %v396_v45 = vadd.f32 %v395_v19, %v394_v36  ;;  %v268_v46 = vadd.f32 %v267_v27, %v266_v60  ;;  %v333_v48 = vadd.f32 %v332_v40, %v331_v24 }
 0x2b6   :  { %v385_v50 = vrot.slane %v384_v43, 2  ;;  %v397_v51 = vrot.slane %v396_v45, 2  ;;  %v269_v52 = vrot.slane %v268_v46, 1  ;;  %v334_v35 = vrot.slane %v333_v48, 1 }
 0x2b8   :  { %v386_v8 = vadd.f32 %v385_v50, %v384_v43  ;;  %v398_v11 = vadd.f32 %v397_v51, %v396_v45  ;;  %v270_v29 = vadd.f32 %v269_v52, %v268_v46  ;;  %v335_v13 = vadd.f32 %v334_v35, %v333_v48 }
 0x2ba   :  { %455 = vpush %v270_v29  ;;  %v387_v34 = vrot.slane %v386_v8, 1  ;;  %v399_v28 = vrot.slane %v398_v11, 1 }
 0x2bb   :  { %457 = vpush %v298_v53 }
 0x2bc   :  { %459 = vpush %v323_v55  ;;  %v388_v56 = vadd.f32 %v387_v34, %v386_v8  ;;  %v400_v58 = vadd.f32 %v399_v28, %v398_v11 }
 0x2bd   :  { %461 = vpush %v335_v13 }
 0x2be   :  { %463 = vpush %v363_v37 }
 0x2bf   :  { %465 = vpush %v388_v56 }
 0x2c0   :  { %467 = vpush %v400_v58 }
 0x2c7   :  { %s452_s6 = spop %451 }
 0x2c8   :  { %s454_s18 = spop %453 }
 0x2c9   :  { %s259_s3 = ssub.f32 %s448_s1, %s454_s18 }
 0x2eb   :  { %s456_s19 = spop %455 }
 0x2ec   :  { %s458_s20 = spop %457  ;;  %s272_s27 = sadd.f32 %s456_s19, %s259_s3 }
 0x2ed   :  { %s300_s21 = sadd.f32 %s458_s20, %s452_s6  ;;  %s460_s22 = spop %459 }
 0x2ee   :  { %s325_s23 = ssub.f32 %s448_s1, %s460_s22  ;;  %s462_s24 = spop %461 }
 0x2ef   :  { %s464_s25 = spop %463 }
 0x2f0   :  { %s337_s26 = sadd.f32 %s462_s24, %s325_s23  ;;  %s466_s7 = spop %465 }
 0x2f1   :  { %s365_s28 = sadd.f32 %s464_s25, %s300_s21  ;;  %s468_s10 = spop %467 }
 0x2f2   :  { %s390_s29 = ssub.f32 %s448_s1, %s466_s7 }
 0x2f3   :  { %s338_s30 = sadd.f32 %s337_s26, %s272_s27  ;;  %v409_v15 = vstv %s365_s28 }
 0x2f4   :  { %s402_s2 = sadd.f32 %s468_s10, %s390_s29  ;;  %v410_v61 = vsel %vm408_vm7, %v409_v15, 0.0 }
 0x2f6   :  { %s403_s11 = sadd.f32 %s402_s2, %s338_s30 }
 0x2f8   :  { %v413_v2 = vstv %s403_s11 }
 0x2f9   :  { %v414_v3 = vsel %vm412_vm9, %v413_v2, %v410_v61 }
 0x2fa   :  { %v418_v47 = vsel %vm416_vm10, %v417_v62, %v414_v3 }
 0x2fb   :  { %v422_v1 = vsel %vm420_vm11, %v421_v0, %v418_v47 }
 0x2fc   :  { %423 = vst [vmem:[#allocation11] sm:$0xff] %v422_v1 }
 0x2fd   :  { %629 = shalt.err (!%p626_p1)
}
 0x2fe   :  { %433 = dma.vmem_to_hbm [thread:$0]  %s431_s12, 128, %s893_s9, [#allocation4]  }
 0x2ff   :  { %644 = dma.done.wait [#allocation4], 128  }
 0x300   :  { %645 = vsyncadd [#allocation4], 4294967168 }
 0x301   :  { %437 = vsyncpa [#allocation3], 1 }
 0x302   :  { %438 = vsyncpa [#allocation6], 1 }
 0x303   :  { %439 = vsyncpa [#allocation9], 1 }
 0x304   :  { %440 = vsyncpa [#allocation4], 1 }

</bundles_post_ra>
